<compile_context>
chip_gen: v6e
topology: v6e:2x2x1
jax: 0.10.0
libtpu: 0.0.40
codegen_flags: <defaults>
</compile_context>

<pallas_src>
import math
import numpy as np

import jax
import jax.numpy as jnp
from jax.experimental import pallas as pl
from jax.experimental.pallas import tpu as pltpu


# ----------------------------------------------------------------------------
# Host-side (plain numpy) construction of the StronglyEntanglingLayers unitary.
# This is parameter setup / glue — the weights are constants of the module.
# ----------------------------------------------------------------------------
def _rot(phi, theta, omega):
    """PennyLane qml.Rot(phi, theta, omega) = RZ(omega) RY(theta) RZ(phi)."""
    c, s = np.cos(theta / 2.0), np.sin(theta / 2.0)
    return np.array(
        [
            [np.exp(-1j * (phi + omega) / 2) * c, -np.exp(1j * (phi - omega) / 2) * s],
            [np.exp(-1j * (phi - omega) / 2) * s, np.exp(1j * (phi + omega) / 2) * c],
        ],
        dtype=np.complex128,
    )


def _expand_1q(g, wire, n):
    # PennyLane convention: wire 0 is the most-significant bit.
    return np.kron(np.kron(np.eye(2 ** wire), g), np.eye(2 ** (n - 1 - wire)))


def _cnot(control, target, n):
    dim = 2 ** n
    m = np.zeros((dim, dim), dtype=np.complex128)
    for k in range(dim):
        if (k >> (n - 1 - control)) & 1:
            kp = k ^ (1 << (n - 1 - target))
        else:
            kp = k
        m[kp, k] = 1.0
    return m


def strongly_entangling_unitary(weights, n_qubits):
    """weights: (L, n_qubits, 3) -> full 2^n x 2^n circuit unitary."""
    L = weights.shape[0]
    dim = 2 ** n_qubits
    U = np.eye(dim, dtype=np.complex128)
    for l in range(L):
        for w in range(n_qubits):
            U = _expand_1q(_rot(*weights[l, w]), w, n_qubits) @ U
        if n_qubits > 1:
            r = (l % (n_qubits - 1)) + 1  # default `ranges` of StronglyEntanglingLayers
            for w in range(n_qubits):
                U = _cnot(w, (w + r) % n_qubits, n_qubits) @ U
    return U


def pauli_z_signs(n_qubits):
    dim = 2 ** n_qubits
    z = np.empty((dim, n_qubits), dtype=np.float32)
    for k in range(dim):
        for i in range(n_qubits):
            z[k, i] = 1.0 - 2.0 * ((k >> (n_qubits - 1 - i)) & 1)
    return z


def _round_up(x, m):
    return ((x + m - 1) // m) * m


# ----------------------------------------------------------------------------
# Pallas kernel: one batch tile of the whole forward hot path.
#   x_ref    : (TILE_B, D)        raw (unnormalized) inputs
#   wpsi_ref : (D, 2*2^n)         [U_real.T | U_imag.T] fused unitary columns
#   zw_ref   : (2^n, OUT_PAD)     (zsign @ W_out.T) zero-padded to 128 lanes
#   b_ref    : (1, OUT_PAD)       bias zero-padded to 128 lanes
#   out_ref  : (TILE_B, OUT_PAD)  lane-dense output tile
# ----------------------------------------------------------------------------
def qnet_kernel(x_ref, wpsi_ref, zw_ref, b_ref, out_ref):
    x = x_ref[...]                                                     # (TB, D)
    # Single fused lane-dense matmul: [psi_r | psi_i] of the UNNORMALIZED input.
    psi = jnp.dot(x, wpsi_ref[...], preferred_element_type=jnp.float32)  # (TB, 2*dim)
    dim = wpsi_ref.shape[1] // 2
    psi_sq = psi * psi
    prob = psi_sq[:, :dim] + psi_sq[:, dim:]                           # |psi_k|^2, unnormalized
    # Deferred AmplitudeEmbedding(normalize=True): scale by 1/||x||^2 per row,
    # applied AFTER the matmuls (it commutes through |psi|^2 and the linear head).
    inv_sq = pl.reciprocal(jnp.sum(x * x, axis=-1, keepdims=True), approx=False)
    # Fused <Z_i> projection + final Linear(n_qubits -> out), padded to 128 lanes.
    out = jnp.dot(prob, zw_ref[...], preferred_element_type=jnp.float32)
    out_ref[...] = out * inv_sq + b_ref[...]


def hybrid_quantum_qnetwork(x, w_psi, zw_pad, b_pad, output_dim, tile_b=256):
    """x: (B, D) f32.  Returns (B, output_dim) f32 Q-values."""
    B, D = x.shape
    dim2 = w_psi.shape[1]          # 2 * 2^n_qubits
    out_pad = zw_pad.shape[1]      # 128 (lane-dense)

    tile_b = min(tile_b, _round_up(B, 8))          # multiple of 8 (f32 sublane)
    b_padded = _round_up(B, tile_b)
    if b_padded != B:
        x = jnp.pad(x, ((0, b_padded - B), (0, 0)))
    grid = (b_padded // tile_b,)

    cost = pl.CostEstimate(
        flops=2 * b_padded * D * dim2            # fused unitary matmul
        + 3 * b_padded * dim2                    # square + combine + scale
        + 2 * b_padded * (dim2 // 2) * out_pad,  # fused Z/Linear matmul
        transcendentals=0,
        bytes_accessed=4 * (b_padded * D + D * dim2 + (dim2 // 2) * out_pad
                            + out_pad + b_padded * out_pad),
    )

    out = pl.pallas_call(
        qnet_kernel,
        out_shape=jax.ShapeDtypeStruct((b_padded, out_pad), jnp.float32),
        grid=grid,
        in_specs=[
            pl.BlockSpec((tile_b, D), lambda b: (b, 0)),
            pl.BlockSpec((D, dim2), lambda b: (0, 0)),          # resident weights
            pl.BlockSpec((dim2 // 2, out_pad), lambda b: (0, 0)),
            pl.BlockSpec((1, out_pad), lambda b: (0, 0)),
        ],
        out_specs=pl.BlockSpec((tile_b, out_pad), lambda b: (b, 0)),
        compiler_params=pltpu.CompilerParams(dimension_semantics=("parallel",)),
        cost_estimate=cost,
    )(x, w_psi, zw_pad, b_pad)
    return out[:B, :output_dim]


# ----------------------------------------------------------------------------
# Pure numpy reference (same math, double precision) for a correctness check.
# ----------------------------------------------------------------------------
def reference_forward(x, U, input_dim, zsign, w_out, b_out):
    xn = x / np.linalg.norm(x, axis=1, keepdims=True)
    psi = xn.astype(np.complex128) @ U[:, :input_dim].T
    prob = np.abs(psi) ** 2
    q = prob @ zsign.astype(np.float64)
    return q @ w_out.astype(np.float64) + b_out.astype(np.float64)


if __name__ == "__main__":
    # ---- module hyper-parameters (small, consistent with the torch module) ----
    input_dim = 64          # features per state vector fed to the qlayer
    output_dim = 4          # number of discrete actions (Q-values)
    qnn_layers = 2
    last_w_scale = 1.0
    batch = 8

    n_qubits = math.ceil(math.log(input_dim, 2))   # AMPLITUDE_ENCODING -> 6
    dim = 2 ** n_qubits
    OUT_PAD = 128                                  # lane-dense output width

    key = jax.random.PRNGKey(0)
    k_x, k_ent, k_w = jax.random.split(key, 3)

    # ---- deterministic parameter init ----
    # TorchLayer default: entangling weights ~ U(0, 2*pi), shape (L, n_qubits, 3).
    ent_w = np.asarray(
        jax.random.uniform(k_ent, (qnn_layers, n_qubits, 3), minval=0.0, maxval=2.0 * math.pi),
        dtype=np.float64,
    )
    # Linear(n_qubits, output_dim): kaiming_uniform_(fan_in, relu) * last_w_scale, zero bias.
    gain = math.sqrt(2.0)
    bound = gain * math.sqrt(3.0 / n_qubits)
    w_out_t = np.asarray(
        jax.random.uniform(k_w, (output_dim, n_qubits), minval=-bound, maxval=bound),
        dtype=np.float32,
    ) * last_w_scale                               # torch layout (out, in)
    b_out = np.zeros((1, output_dim), dtype=np.float32)

    # ---- precompute circuit unitary + fused weights (host glue) ----
    U = strongly_entangling_unitary(ent_w, n_qubits)                 # (2^n, 2^n) complex128
    UrT = np.ascontiguousarray(U.real.T[:input_dim])                 # (D, 2^n)
    UiT = np.ascontiguousarray(U.imag.T[:input_dim])                 # (D, 2^n)
    w_psi = np.concatenate([UrT, UiT], axis=1).astype(np.float32)    # (D, 2*2^n) = (64,128)
    zsign = pauli_z_signs(n_qubits)                                  # (2^n, n_qubits)
    zw = (zsign.astype(np.float64) @ w_out_t.T.astype(np.float64)).astype(np.float32)  # (2^n, out)
    zw_pad = np.zeros((dim, OUT_PAD), dtype=np.float32)
    zw_pad[:, :output_dim] = zw
    b_pad = np.zeros((1, OUT_PAD), dtype=np.float32)
    b_pad[:, :output_dim] = b_out

    # ---- example input ----
    x = np.asarray(jax.random.normal(k_x, (batch, input_dim)), dtype=np.float32)

    # ---- run Pallas kernel ----
    out = hybrid_quantum_qnetwork(
        jnp.asarray(x),
        jnp.asarray(w_psi),
        jnp.asarray(zw_pad),
        jnp.asarray(b_pad),
        output_dim,
    )
    out = jax.block_until_ready(out)

    # ---- correctness check against the exact (float64) statevector reference ----
    ref = reference_forward(x.astype(np.float64), U, input_dim, zsign, w_out_t.T, b_out)
    assert np.allclose(np.asarray(out), ref, rtol=1e-4, atol=1e-4), "mismatch vs reference"
    print("KERNEL_OK")
</pallas_src>

<mosaic_0001>
module attributes {stable_mosaic.version = 11 : i64} {
  func.func @qnet_kernel(%arg0: i32, %arg1: memref<8x64xf32, #tpu.memory_space<vmem>>, %arg2: memref<64x128xf32, #tpu.memory_space<vmem>>, %arg3: memref<64x128xf32, #tpu.memory_space<vmem>>, %arg4: memref<1x128xf32, #tpu.memory_space<vmem>>, %arg5: memref<8x128xf32, #tpu.memory_space<vmem>>) attributes {dimension_semantics = [#tpu.dimension_semantics<parallel>], iteration_bounds = array<i64: 1>, scalar_prefetch = 0 : i64, scratch_operands = 0 : i64, tpu.core_type = #tpu.core_type<tc>, window_params = [{transform_indices = @transform_0, window_bounds = array<i64: 8, 64>}, {pipeline_mode = #tpu.pipeline_mode<synchronous>, transform_indices = @transform_1, window_bounds = array<i64: 64, 128>}, {pipeline_mode = #tpu.pipeline_mode<synchronous>, transform_indices = @transform_2, window_bounds = array<i64: 64, 128>}, {pipeline_mode = #tpu.pipeline_mode<synchronous>, transform_indices = @transform_3, window_bounds = array<i64: 1, 128>}, {transform_indices = @transform_4, window_bounds = array<i64: 8, 128>}]} {
    %c0 = arith.constant 0 : index
    %c0_0 = arith.constant 0 : index
    %0 = vector.load %arg1[%c0, %c0_0] : memref<8x64xf32, #tpu.memory_space<vmem>>, vector<8x64xf32>
    %c0_1 = arith.constant 0 : index
    %c0_2 = arith.constant 0 : index
    %1 = vector.load %arg2[%c0_1, %c0_2] : memref<64x128xf32, #tpu.memory_space<vmem>>, vector<64x128xf32>
    %cst = arith.constant dense<0.000000e+00> : vector<8x128xf32>
    %2 = tpu.matmul %0, %1, %cst {dimension_numbers = #tpu.dot_dimension_numbers<[1], [0], [0], [1], [0, 0, 1, 1], [], []>} : vector<8x64xf32>, vector<64x128xf32>, vector<8x128xf32> -> vector<8x128xf32>
    %3 = arith.mulf %2, %2 : vector<8x128xf32>
    %4 = vector.extract_strided_slice %3 {offsets = [0, 0], sizes = [8, 64], strides = [1, 1]} : vector<8x128xf32> to vector<8x64xf32>
    %5 = vector.extract_strided_slice %3 {offsets = [0, 64], sizes = [8, 64], strides = [1, 1]} : vector<8x128xf32> to vector<8x64xf32>
    %6 = arith.addf %4, %5 : vector<8x64xf32>
    %7 = arith.mulf %0, %0 : vector<8x64xf32>
    %cst_3 = arith.constant dense<0.000000e+00> : vector<8xf32>
    %8 = vector.multi_reduction <add>, %7, %cst_3 [1] : vector<8x64xf32> to vector<8xf32>
    %9 = vector.shape_cast %8 : vector<8xf32> to vector<8x1xf32>
    %10 = tpu.reciprocal %9 : vector<8x1xf32> -> vector<8x1xf32>
    %c0_4 = arith.constant 0 : index
    %c0_5 = arith.constant 0 : index
    %11 = vector.load %arg3[%c0_4, %c0_5] : memref<64x128xf32, #tpu.memory_space<vmem>>, vector<64x128xf32>
    %cst_6 = arith.constant dense<0.000000e+00> : vector<8x128xf32>
    %12 = tpu.matmul %6, %11, %cst_6 {dimension_numbers = #tpu.dot_dimension_numbers<[1], [0], [0], [1], [0, 0, 1, 1], [], []>} : vector<8x64xf32>, vector<64x128xf32>, vector<8x128xf32> -> vector<8x128xf32>
    %13 = vector.broadcast %10 : vector<8x1xf32> to vector<8x128xf32>
    %14 = arith.mulf %12, %13 : vector<8x128xf32>
    %c0_7 = arith.constant 0 : index
    %c0_8 = arith.constant 0 : index
    %15 = vector.load %arg4[%c0_7, %c0_8] : memref<1x128xf32, #tpu.memory_space<vmem>>, vector<1x128xf32>
    %16 = vector.broadcast %15 : vector<1x128xf32> to vector<8x128xf32>
    %17 = arith.addf %14, %16 : vector<8x128xf32>
    %c0_9 = arith.constant 0 : index
    %c0_10 = arith.constant 0 : index
    %18 = vector.load %arg5[%c0_9, %c0_10] : memref<8x128xf32, #tpu.memory_space<vmem>>, vector<8x128xf32>
    tpu.vector_store %arg5[%c0_9, %c0_10], %17 {strides = array<i32>} : memref<8x128xf32, #tpu.memory_space<vmem>>, vector<8x128xf32>,
    return
  }
  func.func @transform_0(%arg0: i32) -> (i32, i32) {
    %c0_i32 = arith.constant 0 : i32
    %c0_i32_0 = arith.constant 0 : i32
    return %arg0, %c0_i32 : i32, i32
  }
  func.func @transform_1(%arg0: i32) -> (i32, i32) {
    %c0_i32 = arith.constant 0 : i32
    %c0_i32_0 = arith.constant 0 : i32
    %c0_i32_1 = arith.constant 0 : i32
    return %c0_i32, %c0_i32_0 : i32, i32
  }
  func.func @transform_2(%arg0: i32) -> (i32, i32) {
    %c0_i32 = arith.constant 0 : i32
    %c0_i32_0 = arith.constant 0 : i32
    %c0_i32_1 = arith.constant 0 : i32
    return %c0_i32, %c0_i32_0 : i32, i32
  }
  func.func @transform_3(%arg0: i32) -> (i32, i32) {
    %c0_i32 = arith.constant 0 : i32
    %c0_i32_0 = arith.constant 0 : i32
    %c0_i32_1 = arith.constant 0 : i32
    return %c0_i32, %c0_i32_0 : i32, i32
  }
  func.func @transform_4(%arg0: i32) -> (i32, i32) {
    %c0_i32 = arith.constant 0 : i32
    %c0_i32_0 = arith.constant 0 : i32
    return %arg0, %c0_i32 : i32, i32
  }
}

</mosaic_0001>

<bundles_post_ra>
// kernel: tpu_custom_call.1
= control target key start
LH: loop header
LB: loop body
LE: loop exit
PB: predicated region body
PF: predicated region fallthrough
CT: control target
= control target key end

     0   :  { %9 = vsyncpa [#allocation3], 0  ;;  %s466_s0 = inlined_call_operand.hbm [shape: f32[8,64], index: 0, kind: input, shape index: {}]   ;;  %s467_s1 = inlined_call_operand.hbm [shape: f32[64,128], index: 1, kind: input, shape index: {}]   ;;  %s468_s2 = inlined_call_operand.hbm [shape: f32[64,128], index: 2, kind: input, shape index: {}]   ;;  %s469_s3 = inlined_call_operand.vmem [shape: f32[1,128], index: 3, kind: input, shape index: {}]   ;;  %s470_s4 = inlined_call_operand.hbm [shape: f32[8,128], index: 4, kind: output, shape index: {}]  }
   0x1   :  { %10 = vsyncpa [#allocation6], 0 }
   0x2   :  { %11 = vsyncpa [#allocation4], 0  ;;  %s414_s15 = smov [#allocation5]  }
   0x3   :  { %s27_s16 = sshll.u32 %s414_s15, 4  ;;  %s28_s16 = int_to_ptr.vmem [resolvable:$true] %s27_s16 }
   0x4   :  { %s336_s17 = scalar_lea.vmem %s28_s16, 1024  ;;  %p341_p1 = scmp.lt.s32.totalorder %s28_s16, %s28_s16 }
   0x5   :  { %p337_p0 = scmp.ne.s32.totalorder %s28_s16, %s336_s17  ;;  %p342_p2 = scmp.lt.s32.totalorder %s336_s17, %s336_s17 }
   0x7   :  { %p343_p3 = por %p342_p2, %p341_p1 }
   0x9   :  { %p344_p4 = pnand %p343_p3, %p337_p0 }
   0xb   :  { %347 = shalt.err (!%p344_p4)
}
   0xc   :  { %s415_s18 = smov 128   ;;  %s416_s19 = smov 8  }
   0xd   :  { %33 = dma.hbm_to_vmem [thread:$0]  %s467_s1, 1024, %s28_s16, [#allocation6], %s415_s18, %s415_s18, %s416_s19  }
   0xe   :  { %s417_s22 = smov [#allocation2]   ;;  %s418_s24 = smov [#allocation7]  }
   0xf   :  { %s18_s23 = sshll.u32 %s417_s22, 4  ;;  %s39_s25 = sshll.u32 %s418_s24, 4  ;;  %s19_s23 = int_to_ptr.vmem [resolvable:$true] %s18_s23  ;;  %s40_s25 = int_to_ptr.vmem [resolvable:$true] %s39_s25 }
  0x10   :  { %s356_s26 = scalar_lea.vmem %s19_s23, 128  ;;  %p361_p6 = scmp.lt.s32.totalorder %s19_s23, %s19_s23 }
  0x11   :  { %p357_p5 = scmp.ne.s32.totalorder %s19_s23, %s356_s26  ;;  %p362_p7 = scmp.lt.s32.totalorder %s356_s26, %s356_s26 }
  0x13   :  { %p363_p8 = por %p362_p7, %p361_p6 }
  0x15   :  { %p364_p9 = pnand %p363_p8, %p357_p5 }
  0x17   :  { %367 = shalt.err (!%p364_p9)
}
  0x18   :  { %21 = dma.hbm_to_vmem [thread:$0]  %s466_s0, 128, %s19_s23, [#allocation3]  }
  0x19   :  { %s376_s29 = scalar_lea.vmem %s40_s25, 1024  ;;  %p381_p11 = scmp.lt.s32.totalorder %s40_s25, %s40_s25 }
  0x1a   :  { %p377_p10 = scmp.ne.s32.totalorder %s40_s25, %s376_s29  ;;  %p382_p12 = scmp.lt.s32.totalorder %s376_s29, %s376_s29 }
  0x1c   :  { %p383_p13 = por %p382_p12, %p381_p11 }
  0x1e   :  { %p384_p0 = pnand %p383_p13, %p377_p10 }
  0x20   :  { %387 = shalt.err (!%p384_p0)
}
  0x21   :  { %45 = dma.hbm_to_vmem [thread:$0]  %s468_s2, 1024, %s40_s25, [#allocation6], %s415_s18, %s415_s18, %s416_s19  }
  0x22   :  { %408 = dma.done.wait [#allocation3], 128  }
  0x23   :  { %409 = vsyncadd [#allocation3], 4294967168 }
  0x24   :  { %410 = dma.done.wait [#allocation6], 2048  }
  0x25   :  { %411 = vsyncadd [#allocation6], 4294965248  ;;  %v419_v0 = vmov 0.0   ;;  %vm420_vm0 = vmmov 0   ;;  %v65_v1 = vld [vmem:[#allocation5 + $0x38] sm:$0xff]  ;;  %v64_v2 = vld [vmem:[#allocation5 + $0x30] sm:$0xff] }
  0x26   :  { %279 = vmatprep.subr.mxu0 %v419_v0  ;;  %295 = vmatprep.mubr.msk.f32.mxu0 %vm420_vm0, %v419_v0  ;;  %v63_v3 = vld [vmem:[#allocation5 + $0x28] sm:$0xff]  ;;  %v62_v4 = vld [vmem:[#allocation5 + $0x20] sm:$0xff]  ;;  %v61_v5 = vld [vmem:[#allocation5 + $0x18] sm:$0xff]  ;;  %vm66_vm1 = vcmask 523264   ;;  %s421_s0 = smov 64   ;;  %s422_s6 = smov [#allocation8]  }
  0x27   :  { %298 = vmatprep.subr.mxu1 %v419_v0  ;;  %314 = vmatprep.mubr.msk.f32.mxu1 %vm420_vm0, %v419_v0  ;;  %v60_v6 = vld [vmem:[#allocation5 + $0x10] sm:$0xff]  ;;  %v59_v7 = vld [vmem:[#allocation5 + $0x8] sm:$0xff]  ;;  %v58_v8 = vld [vmem:[#allocation5] sm:$0xff]  ;;  %s248_s7 = sshll.u32 %s422_s6, 4  ;;  %s249_s7 = int_to_ptr.vmem [resolvable:$true] %s248_s7 }
  0x28   :  { %280 = vmatpush3.msra.mxu0 %v65_v1  ;;  %v57_v9 = vld [vmem:[#allocation2] sm:$0xff]  ;;  %v157_v11 = vld [vmem:[#allocation7 + $0x30] sm:$0xff]  ;;  %v156_v12 = vld [vmem:[#allocation7 + $0x28] sm:$0xff]  ;;  %s388_s8 = scalar_lea.vmem %s249_s7, 128  ;;  %p393_p2 = scmp.lt.s32.totalorder %s249_s7, %s249_s7 }
  0x29   :  { %281 = vmatprep.subr.mxu0 %v419_v0  ;;  %v158_v10 = vld [vmem:[#allocation7 + $0x38] sm:$0xff]  ;;  %v155_v13 = vld [vmem:[#allocation7 + $0x20] sm:$0xff]  ;;  %v153_v15 = vld [vmem:[#allocation7 + $0x10] sm:$0xff]  ;;  %v146_v21 = vmul.f32 %v57_v9, %v57_v9  ;;  %p389_p1 = scmp.ne.s32.totalorder %s249_s7, %s388_s8  ;;  %p394_p3 = scmp.lt.s32.totalorder %s388_s8, %s388_s8 }
  0x2a   :  { %282 = vmatpush3.msra.mxu0 %v64_v2  ;;  %299 = vmatpush3.msra.mxu1 %v158_v10  ;;  %v154_v14 = vld [vmem:[#allocation7 + $0x18] sm:$0xff]  ;;  %v152_v16 = vld [vmem:[#allocation7 + $0x8] sm:$0xff]  ;;  %v151_v17 = vld [vmem:[#allocation7] sm:$0xff] }
  0x2b   :  { %283 = vmatprep.subr.mxu0 %v419_v0  ;;  %300 = vmatprep.subr.mxu1 %v419_v0  ;;  %v147_v22 = vsel %vm66_vm1, %v146_v21, 0.0  ;;  %v260_v28 = vld [vmem:[%s469_s3] ss:$0 sm:$0xff]  ;;  %p395_p4 = por %p394_p3, %p393_p2 }
  0x2c   :  { %284 = vmatpush3.msra.mxu0 %v63_v3  ;;  %301 = vmatpush3.msra.mxu1 %v157_v11 }
  0x2d   :  { %285 = vmatprep.subr.mxu0 %v419_v0  ;;  %302 = vmatprep.subr.mxu1 %v419_v0  ;;  %p396_p5 = pnand %p395_p4, %p389_p1 }
  0x2e   :  { %286 = vmatpush3.msra.mxu0 %v62_v4  ;;  %303 = vmatpush3.msra.mxu1 %v156_v12 }
  0x2f   :  { %287 = vmatprep.subr.mxu0 %v419_v0  ;;  %304 = vmatprep.subr.mxu1 %v419_v0 }
  0x30   :  { %288 = vmatpush3.msra.mxu0 %v61_v5  ;;  %305 = vmatpush3.msra.mxu1 %v155_v13 }
  0x31   :  { %289 = vmatprep.subr.mxu0 %v419_v0  ;;  %306 = vmatprep.subr.mxu1 %v419_v0 }
  0x32   :  { %290 = vmatpush3.msra.mxu0 %v60_v6  ;;  %307 = vmatpush3.msra.mxu1 %v154_v14 }
  0x33   :  { %291 = vmatprep.subr.mxu0 %v419_v0  ;;  %308 = vmatprep.subr.mxu1 %v419_v0 }
  0x34   :  { %292 = vmatpush3.msra.mxu0 %v59_v7  ;;  %309 = vmatpush3.msra.mxu1 %v153_v15 }
  0x35   :  { %293 = vmatprep.subr.mxu0 %v419_v0  ;;  %310 = vmatprep.subr.mxu1 %v419_v0 }
  0x36   :  { %294 = vmatpush3.msra.mxu0 %v58_v8  ;;  %311 = vmatpush3.msra.mxu1 %v152_v16 }
  0x37   :  { %296 = vmatmul.mubr.msk.f32.vlgmr.msra.gmra.mxu0 %vm66_vm1, %v57_v9  ;;  %312 = vmatprep.subr.mxu1 %v419_v0 }
  0x38   :  { %313 = vmatpush3.msra.mxu1 %v151_v17 }
  0xf7   :  { %v136_v18 = vpop.f32.mrf.mxu0 }
  0xf8   :  { %v140_v19 = vmul.f32 %v136_v18, %v136_v18 }
  0xf9   :  { %v297_v20 = vpop.f32.mrf.mxu0 }
  0xfa   :  { %142 = vrot.lane.b32.xlu0 %v140_v19, %s421_s0 }
 0x119   :  { %148 = vadd.xlane.f32.xlu0 %v147_v22 }
 0x16c   :  { %v143_v23 = vpop.permute.xlu0 %142 }
 0x16d   :  { %v145_v24 = vadd.f32 %v143_v23, %v140_v19 }
 0x16f   :  { %315 = vmatmul.mubr.msk.f32.vlgmr.msra.gmra.mxu1 %vm66_vm1, %v145_v24 }
 0x1a2   :  { %v149_v25 = vpop.xlane.xlu0 %148 }
 0x1a3   :  { %326 = vrcp.f32 %v149_v25 }
 0x1b0   :  { %v327_v26 = vpop.eup %326 }
 0x22f   :  { %v228_v27 = vpop.f32.mrf.mxu1 }
 0x230   :  { %v232_v29 = vmul.f32 %v327_v26, %v228_v27 }
 0x231   :  { %v316_v30 = vpop.f32.mrf.mxu1 }
 0x232   :  { %v240_v31 = vadd.f32 %v260_v28, %v232_v29 }
 0x234   :  { %241 = vst [vmem:[#allocation8] sm:$0xff] %v240_v31 }
 0x235   :  { %399 = shalt.err (!%p396_p5)
}
 0x236   :  { %251 = dma.vmem_to_hbm [thread:$0]  %s249_s7, 128, %s470_s4, [#allocation4]  }
 0x237   :  { %412 = dma.done.wait [#allocation4], 128  }
 0x238   :  { %413 = vsyncadd [#allocation4], 4294967168 }
 0x239   :  { %255 = vsyncpa [#allocation3], 1 }
 0x23a   :  { %256 = vsyncpa [#allocation6], 1 }
 0x23b   :  { %257 = vsyncpa [#allocation4], 1 }

</bundles_post_ra>
